<compile_context>
chip_gen: v7x
topology: tpu7x:2x2x1
jax: 0.10.0
libtpu: 0.0.40
codegen_flags: <defaults>
</compile_context>

<pallas_src>
import functools

import jax
import jax.numpy as jnp
from jax import lax
from jax.experimental import pallas as pl
from jax.experimental.pallas import tpu as pltpu

LANE = 128
SUBLANE = 8
_VMEM_BUDGET = 24 * 1024 * 1024    # target for double-buffered (in+out) block bytes
_VMEM_LIMIT = 48 * 1024 * 1024     # explicit scoped-VMEM cap (safe on v5e/v6e/v7x)


def _round_up(v, m):
    return ((v + m - 1) // m) * m


def _pick_feat_tile(D, cap, override):
    if override is not None:
        td = override
    else:
        td = min(_round_up(D, LANE), cap)
    return max(LANE, (td // LANE) * LANE)


def _pick_row_tile(M, td, override, bytes_per_elem_budget=16):
    if override is not None:
        tm = override
    else:
        tm = _VMEM_BUDGET // (bytes_per_elem_budget * td)
    tm = (tm // SUBLANE) * SUBLANE
    return max(SUBLANE, min(tm, 1024, _round_up(M, SUBLANE)))


# -----------------------------------------------------------------------------
# Kernels
# -----------------------------------------------------------------------------

def _bn_train_fused_kernel(x_ref, p_ref, o_ref, stats_ref, *,
                           momentum, epsilon, m_total):
    """Single-pass training BN for one feature tile (whole batch resident).

    p_ref rows: [gamma, beta, running_mean, running_var]
    stats_ref rows (written): [batch_mean, batch_var, new_run_mean, new_run_var]
    """
    x = x_ref[...].astype(jnp.float32)                     # (M, TD)
    gamma = p_ref[0:1, :]
    beta = p_ref[1:2, :]
    rmean = p_ref[2:3, :]
    rvar = p_ref[3:4, :]

    mean = jnp.sum(x, axis=0, keepdims=True) * (1.0 / m_total)
    centered = x - mean
    # torch.var default is unbiased (divide by M - 1); M == 1 -> inf/NaN, same
    # behavior as the PyTorch module.
    var = jnp.sum(centered * centered, axis=0, keepdims=True) * (1.0 / (m_total - 1))

    inv_std = lax.rsqrt(var + epsilon)                     # EUP transcendental
    scale = gamma * inv_std                                # (1, TD) per-tile math
    shift = beta - mean * scale
    o_ref[...] = (x * scale + shift).astype(o_ref.dtype)   # 2 VALU ops / element

    stats_ref[0:1, :] = mean
    stats_ref[1:2, :] = var
    stats_ref[2:3, :] = momentum * rmean + (1.0 - momentum) * mean
    stats_ref[3:4, :] = momentum * rvar + (1.0 - momentum) * var


def _bn_stats_kernel(x_ref, rs_ref, stats_ref, sum_ref, ssq_ref, *,
                     momentum, m_total, tm):
    """Pass 1 of the large-M path: accumulate per-feature sum / sum-of-squares
    over M chunks (grid axis 1, 'arbitrary'); finalize mean / unbiased var and
    the running-stat update on the last chunk.

    rs_ref rows: [running_mean, running_var]
    stats_ref rows: [batch_mean, batch_var, new_run_mean, new_run_var]
    """
    m_idx = pl.program_id(1)

    @pl.when(m_idx == 0)
    def _():
        sum_ref[...] = jnp.zeros_like(sum_ref)
        ssq_ref[...] = jnp.zeros_like(ssq_ref)

    x = x_ref[...].astype(jnp.float32)                     # (TM, TD)
    # Mask rows past the real batch size (ragged last M chunk reads stale VMEM).
    rows = lax.broadcasted_iota(jnp.int32, x.shape, 0) + m_idx * tm
    x = jnp.where(rows < m_total, x, 0.0)

    sum_ref[...] += jnp.sum(x, axis=0, keepdims=True)
    ssq_ref[...] += jnp.sum(x * x, axis=0, keepdims=True)

    @pl.when(m_idx == pl.num_programs(1) - 1)
    def _():
        s = sum_ref[...]
        mean = s * (1.0 / m_total)
        var = (ssq_ref[...] - s * mean) * (1.0 / (m_total - 1))   # unbiased
        stats_ref[0:1, :] = mean
        stats_ref[1:2, :] = var
        stats_ref[2:3, :] = momentum * rs_ref[0:1, :] + (1.0 - momentum) * mean
        stats_ref[3:4, :] = momentum * rs_ref[1:2, :] + (1.0 - momentum) * var


def _bn_normalize_kernel(x_ref, p_ref, o_ref, *, epsilon):
    """Affine-normalize one (TM, TD) tile.

    p_ref rows: [gamma, beta, mean, var] (batch stats for training pass 2,
    running stats for eval). Params use a constant block index along the M grid
    axis so they stay VMEM-resident.
    """
    gamma = p_ref[0:1, :]
    beta = p_ref[1:2, :]
    mean = p_ref[2:3, :]
    var = p_ref[3:4, :]
    inv_std = lax.rsqrt(var + epsilon)
    scale = gamma * inv_std
    shift = beta - mean * scale
    o_ref[...] = (x_ref[...].astype(jnp.float32) * scale + shift).astype(o_ref.dtype)


# -----------------------------------------------------------------------------
# pallas_call wrappers
# -----------------------------------------------------------------------------

def _normalize_call(x, packed, *, epsilon, td_override=None, tm_override=None):
    M, D = x.shape
    td = _pick_feat_tile(D, 2048, td_override)
    tm = _pick_row_tile(M, td, tm_override)
    grid = (pl.cdiv(D, td), pl.cdiv(M, tm))      # M axis innermost -> params stay resident
    return pl.pallas_call(
        functools.partial(_bn_normalize_kernel, epsilon=epsilon),
        grid=grid,
        in_specs=[pl.BlockSpec((tm, td), lambda j, i: (i, j)),
                  pl.BlockSpec((4, td), lambda j, i: (0, j))],
        out_specs=pl.BlockSpec((tm, td), lambda j, i: (i, j)),
        out_shape=jax.ShapeDtypeStruct((M, D), x.dtype),
        compiler_params=pltpu.CompilerParams(
            dimension_semantics=("parallel", "parallel"),
            vmem_limit_bytes=_VMEM_LIMIT),
    )(x, packed)


def _stats_call(x, run_packed, *, momentum, td_override=None, tm_override=None):
    M, D = x.shape
    td = _pick_feat_tile(D, 512, td_override)
    tm = _pick_row_tile(M, td, tm_override)
    grid = (pl.cdiv(D, td), pl.cdiv(M, tm))
    return pl.pallas_call(
        functools.partial(_bn_stats_kernel, momentum=momentum, m_total=M, tm=tm),
        grid=grid,
        in_specs=[pl.BlockSpec((tm, td), lambda j, i: (i, j)),
                  pl.BlockSpec((2, td), lambda j, i: (0, j))],
        out_specs=pl.BlockSpec((4, td), lambda j, i: (0, j)),
        out_shape=jax.ShapeDtypeStruct((4, D), jnp.float32),
        scratch_shapes=[pltpu.VMEM((1, td), jnp.float32),
                        pltpu.VMEM((1, td), jnp.float32)],
        compiler_params=pltpu.CompilerParams(
            dimension_semantics=("parallel", "arbitrary"),
            vmem_limit_bytes=_VMEM_LIMIT),
    )(x, run_packed)


def _train_fused_call(x, packed, *, momentum, epsilon, td):
    M, D = x.shape
    grid = (pl.cdiv(D, td),)
    return pl.pallas_call(
        functools.partial(_bn_train_fused_kernel, momentum=momentum,
                          epsilon=epsilon, m_total=M),
        grid=grid,
        in_specs=[pl.BlockSpec((M, td), lambda j: (0, j)),
                  pl.BlockSpec((4, td), lambda j: (0, j))],
        out_specs=(pl.BlockSpec((M, td), lambda j: (0, j)),
                   pl.BlockSpec((4, td), lambda j: (0, j))),
        out_shape=(jax.ShapeDtypeStruct((M, D), x.dtype),
                   jax.ShapeDtypeStruct((4, D), jnp.float32)),
        compiler_params=pltpu.CompilerParams(
            dimension_semantics=("parallel",),
            vmem_limit_bytes=_VMEM_LIMIT),
    )(x, packed)


def batch_norm_forward(x, gamma, beta, running_mean, running_var, *,
                       training, momentum=0.9, epsilon=1e-5,
                       force_two_pass=False,
                       _td=None, _tm_stats=None, _tm_norm=None):
    """Functional forward of BatchNormLayer.

    x: [M, D]; gamma/beta/running_mean/running_var: [1, D].
    Returns (out, new_running_mean, new_running_var)  (module mutates its state
    in-place; here the updated running stats are returned functionally).
    """
    M, D = x.shape
    assert gamma.shape == (1, D) and beta.shape == (1, D)
    assert running_mean.shape == (1, D) and running_var.shape == (1, D)

    if not training:
        packed = jnp.concatenate(
            [gamma, beta, running_mean, running_var], axis=0).astype(jnp.float32)
        out = _normalize_call(x, packed, epsilon=epsilon,
                              td_override=_td, tm_override=_tm_norm)
        return out, running_mean, running_var

    # ---- training ----
    # Fused single-pass path if the whole batch fits one feature tile within the
    # double-buffered VMEM budget (2 bufs x (x in + out) x M x TD x 4 B).
    td_budget = (_VMEM_BUDGET // (16 * max(M, 1))) // LANE * LANE
    use_fused = (not force_two_pass) and td_budget >= LANE

    if use_fused:
        if _td is not None:
            td = _pick_feat_tile(D, 512, _td)
        else:
            td = max(LANE, min(_round_up(D, LANE), 512, td_budget))
        packed = jnp.concatenate(
            [gamma, beta, running_mean, running_var], axis=0).astype(jnp.float32)
        out, stats = _train_fused_call(x, packed, momentum=momentum,
                                       epsilon=epsilon, td=td)
    else:
        # Two-pass path for large M: stats accumulation then an M-tiled
        # normalize sweep (one extra read of x, but no full-batch VMEM cap).
        run_packed = jnp.concatenate(
            [running_mean, running_var], axis=0).astype(jnp.float32)
        stats = _stats_call(x, run_packed, momentum=momentum,
                            td_override=_td, tm_override=_tm_stats)
        norm_packed = jnp.concatenate(
            [gamma.astype(jnp.float32), beta.astype(jnp.float32), stats[0:2, :]],
            axis=0)
        out = _normalize_call(x, norm_packed, epsilon=epsilon,
                              td_override=_td, tm_override=_tm_norm)

    new_rm = stats[2:3, :].astype(running_mean.dtype)
    new_rv = stats[3:4, :].astype(running_var.dtype)
    return out, new_rm, new_rv


# -----------------------------------------------------------------------------
# Self-test
# -----------------------------------------------------------------------------

if __name__ == "__main__":
    key = jax.random.PRNGKey(0)
    momentum, epsilon = 0.9, 1e-5

    def reference(x, gamma, beta, rm, rv, training):
        if training:
            b_mean = jnp.mean(x, axis=0, keepdims=True)
            b_var = jnp.var(x, axis=0, keepdims=True, ddof=1)
            new_rm = momentum * rm + (1.0 - momentum) * b_mean
            new_rv = momentum * rv + (1.0 - momentum) * b_var
        else:
            b_mean, b_var, new_rm, new_rv = rm, rv, rm, rv
        out = gamma * ((x - b_mean) / jnp.sqrt(b_var + epsilon)) + beta
        return out, new_rm, new_rv

    def check(name, got, want, atol=1e-4, rtol=1e-4):
        assert got.shape == want.shape, (name, got.shape, want.shape)
        assert bool(jnp.allclose(got, want, atol=atol, rtol=rtol)), name

    # --- Case 1: small FCNN-like shapes -> fused training path + eval path ---
    batch, input_size = 8, 64
    k1, k2, k3 = jax.random.split(key, 3)
    x = jax.random.normal(k1, (batch, input_size), jnp.float32)
    gamma = 1.0 + 0.1 * jax.random.normal(k2, (1, input_size), jnp.float32)
    beta = 0.1 * jax.random.normal(k3, (1, input_size), jnp.float32)
    rm = jnp.zeros((1, input_size), jnp.float32)
    rv = jnp.ones((1, input_size), jnp.float32)

    out, nrm, nrv = batch_norm_forward(
        x, gamma, beta, rm, rv, training=True, momentum=momentum, epsilon=epsilon)
    jax.block_until_ready(out)
    r_out, r_rm, r_rv = reference(x, gamma, beta, rm, rv, True)
    check("train_out", out, r_out)
    check("train_rm", nrm, r_rm)
    check("train_rv", nrv, r_rv)

    out_ev, _, _ = batch_norm_forward(
        x, gamma, beta, nrm, nrv, training=False, momentum=momentum, epsilon=epsilon)
    jax.block_until_ready(out_ev)
    r_ev, _, _ = reference(x, gamma, beta, r_rm, r_rv, False)
    check("eval_out", out_ev, r_ev)

    # --- Case 2: ragged shapes exercising the two-pass (large-M) path with
    #     multiple M chunks, a ragged last M chunk, and a ragged feature tile ---
    batch2, input2 = 44, 200
    k4, k5, k6 = jax.random.split(k1, 3)
    x2 = jax.random.normal(k4, (batch2, input2), jnp.float32)
    g2 = 1.0 + 0.1 * jax.random.normal(k5, (1, input2), jnp.float32)
    b2 = 0.1 * jax.random.normal(k6, (1, input2), jnp.float32)
    rm2 = 0.05 * jnp.ones((1, input2), jnp.float32)
    rv2 = 1.1 * jnp.ones((1, input2), jnp.float32)

    out2, nrm2, nrv2 = batch_norm_forward(
        x2, g2, b2, rm2, rv2, training=True, momentum=momentum, epsilon=epsilon,
        force_two_pass=True, _td=128, _tm_stats=16, _tm_norm=16)
    jax.block_until_ready(out2)
    r_out2, r_rm2, r_rv2 = reference(x2, g2, b2, rm2, rv2, True)
    check("twopass_out", out2, r_out2)
    check("twopass_rm", nrm2, r_rm2)
    check("twopass_rv", nrv2, r_rv2, atol=1e-4, rtol=1e-3)

    out2_ev, _, _ = batch_norm_forward(
        x2, g2, b2, nrm2, nrv2, training=False, momentum=momentum,
        epsilon=epsilon, _tm_norm=16)
    jax.block_until_ready(out2_ev)
    r_ev2, _, _ = reference(x2, g2, b2, r_rm2, r_rv2, False)
    check("eval2_out", out2_ev, r_ev2)

    print("KERNEL_OK")
</pallas_src>

<mosaic_0001>
module attributes {stable_mosaic.version = 11 : i64} {
  func.func @_bn_train_fused_kernel(%arg0: i32, %arg1: memref<8x128xf32, #tpu.memory_space<vmem>>, %arg2: memref<4x128xf32, #tpu.memory_space<vmem>>, %arg3: memref<8x128xf32, #tpu.memory_space<vmem>>, %arg4: memref<4x128xf32, #tpu.memory_space<vmem>>) attributes {dimension_semantics = [#tpu.dimension_semantics<parallel>], iteration_bounds = array<i64: 1>, scalar_prefetch = 0 : i64, scratch_operands = 0 : i64, tpu.core_type = #tpu.core_type<tc>, window_params = [{transform_indices = @transform_0, window_bounds = array<i64: 8, 128>}, {transform_indices = @transform_1, window_bounds = array<i64: 4, 128>}, {transform_indices = @transform_2, window_bounds = array<i64: 8, 128>}, {transform_indices = @transform_3, window_bounds = array<i64: 4, 128>}]} {
    %c0 = arith.constant 0 : index
    %c0_0 = arith.constant 0 : index
    %0 = vector.load %arg1[%c0, %c0_0] : memref<8x128xf32, #tpu.memory_space<vmem>>, vector<8x128xf32>
    %c0_1 = arith.constant 0 : index
    %c0_2 = arith.constant 0 : index
    %1 = vector.load %arg2[%c0_1, %c0_2] : memref<4x128xf32, #tpu.memory_space<vmem>>, vector<1x128xf32>
    %c1 = arith.constant 1 : index
    %c0_3 = arith.constant 0 : index
    %2 = vector.load %arg2[%c1, %c0_3] : memref<4x128xf32, #tpu.memory_space<vmem>>, vector<1x128xf32>
    %c2 = arith.constant 2 : index
    %c0_4 = arith.constant 0 : index
    %3 = vector.load %arg2[%c2, %c0_4] : memref<4x128xf32, #tpu.memory_space<vmem>>, vector<1x128xf32>
    %c3 = arith.constant 3 : index
    %c0_5 = arith.constant 0 : index
    %4 = vector.load %arg2[%c3, %c0_5] : memref<4x128xf32, #tpu.memory_space<vmem>>, vector<1x128xf32>
    %cst = arith.constant dense<0.000000e+00> : vector<128xf32>
    %5 = vector.multi_reduction <add>, %0, %cst [0] : vector<8x128xf32> to vector<128xf32>
    %6 = vector.shape_cast %5 : vector<128xf32> to vector<1x128xf32>
    %cst_6 = arith.constant 1.250000e-01 : f32
    %7 = vector.broadcast %cst_6 : f32 to vector<1x128xf32>
    %8 = arith.mulf %6, %7 : vector<1x128xf32>
    %9 = vector.broadcast %8 : vector<1x128xf32> to vector<8x128xf32>
    %10 = arith.subf %0, %9 : vector<8x128xf32>
    %11 = arith.mulf %10, %10 : vector<8x128xf32>
    %cst_7 = arith.constant dense<0.000000e+00> : vector<128xf32>
    %12 = vector.multi_reduction <add>, %11, %cst_7 [0] : vector<8x128xf32> to vector<128xf32>
    %13 = vector.shape_cast %12 : vector<128xf32> to vector<1x128xf32>
    %cst_8 = arith.constant 0.142857149 : f32
    %14 = vector.broadcast %cst_8 : f32 to vector<1x128xf32>
    %15 = arith.mulf %13, %14 : vector<1x128xf32>
    %cst_9 = arith.constant 9.99999974E-6 : f32
    %16 = vector.broadcast %cst_9 : f32 to vector<1x128xf32>
    %17 = arith.addf %15, %16 : vector<1x128xf32>
    %18 = math.rsqrt %17 : vector<1x128xf32>
    %19 = arith.mulf %1, %18 : vector<1x128xf32>
    %20 = arith.mulf %8, %19 : vector<1x128xf32>
    %21 = arith.subf %2, %20 : vector<1x128xf32>
    %22 = vector.broadcast %19 : vector<1x128xf32> to vector<8x128xf32>
    %23 = arith.mulf %0, %22 : vector<8x128xf32>
    %24 = vector.broadcast %21 : vector<1x128xf32> to vector<8x128xf32>
    %25 = arith.addf %23, %24 : vector<8x128xf32>
    %c0_10 = arith.constant 0 : index
    %c0_11 = arith.constant 0 : index
    %26 = vector.load %arg3[%c0_10, %c0_11] : memref<8x128xf32, #tpu.memory_space<vmem>>, vector<8x128xf32>
    tpu.vector_store %arg3[%c0_10, %c0_11], %25 {strides = array<i32>} : memref<8x128xf32, #tpu.memory_space<vmem>>, vector<8x128xf32>,
    %c0_12 = arith.constant 0 : index
    %c0_13 = arith.constant 0 : index
    %27 = vector.load %arg4[%c0_12, %c0_13] : memref<4x128xf32, #tpu.memory_space<vmem>>, vector<1x128xf32>
    tpu.vector_store %arg4[%c0_12, %c0_13], %8 {strides = array<i32>} : memref<4x128xf32, #tpu.memory_space<vmem>>, vector<1x128xf32>,
    %c1_14 = arith.constant 1 : index
    %c0_15 = arith.constant 0 : index
    %28 = vector.load %arg4[%c1_14, %c0_15] : memref<4x128xf32, #tpu.memory_space<vmem>>, vector<1x128xf32>
    tpu.vector_store %arg4[%c1_14, %c0_15], %15 {strides = array<i32>} : memref<4x128xf32, #tpu.memory_space<vmem>>, vector<1x128xf32>,
    %cst_16 = arith.constant 0.899999976 : f32
    %29 = vector.broadcast %cst_16 : f32 to vector<1x128xf32>
    %30 = arith.mulf %29, %3 : vector<1x128xf32>
    %cst_17 = arith.constant 1.000000e-01 : f32
    %31 = vector.broadcast %cst_17 : f32 to vector<1x128xf32>
    %32 = arith.mulf %31, %8 : vector<1x128xf32>
    %33 = arith.addf %30, %32 : vector<1x128xf32>
    %c2_18 = arith.constant 2 : index
    %c0_19 = arith.constant 0 : index
    %34 = vector.load %arg4[%c2_18, %c0_19] : memref<4x128xf32, #tpu.memory_space<vmem>>, vector<1x128xf32>
    tpu.vector_store %arg4[%c2_18, %c0_19], %33 {strides = array<i32>} : memref<4x128xf32, #tpu.memory_space<vmem>>, vector<1x128xf32>,
    %cst_20 = arith.constant 0.899999976 : f32
    %35 = vector.broadcast %cst_20 : f32 to vector<1x128xf32>
    %36 = arith.mulf %35, %4 : vector<1x128xf32>
    %cst_21 = arith.constant 1.000000e-01 : f32
    %37 = vector.broadcast %cst_21 : f32 to vector<1x128xf32>
    %38 = arith.mulf %37, %15 : vector<1x128xf32>
    %39 = arith.addf %36, %38 : vector<1x128xf32>
    %c3_22 = arith.constant 3 : index
    %c0_23 = arith.constant 0 : index
    %40 = vector.load %arg4[%c3_22, %c0_23] : memref<4x128xf32, #tpu.memory_space<vmem>>, vector<1x128xf32>
    tpu.vector_store %arg4[%c3_22, %c0_23], %39 {strides = array<i32>} : memref<4x128xf32, #tpu.memory_space<vmem>>, vector<1x128xf32>,
    return
  }
  func.func @transform_0(%arg0: i32) -> (i32, i32) {
    %c0_i32 = arith.constant 0 : i32
    %c0_i32_0 = arith.constant 0 : i32
    return %c0_i32, %arg0 : i32, i32
  }
  func.func @transform_1(%arg0: i32) -> (i32, i32) {
    %c0_i32 = arith.constant 0 : i32
    %c0_i32_0 = arith.constant 0 : i32
    return %c0_i32, %arg0 : i32, i32
  }
  func.func @transform_2(%arg0: i32) -> (i32, i32) {
    %c0_i32 = arith.constant 0 : i32
    %c0_i32_0 = arith.constant 0 : i32
    return %c0_i32, %arg0 : i32, i32
  }
  func.func @transform_3(%arg0: i32) -> (i32, i32) {
    %c0_i32 = arith.constant 0 : i32
    %c0_i32_0 = arith.constant 0 : i32
    return %c0_i32, %arg0 : i32, i32
  }
}

</mosaic_0001>

<bundles_post_ra>
// kernel: tpu_custom_call.1
= control target key start
LH: loop header
LB: loop body
LE: loop exit
PB: predicated region body
PF: predicated region fallthrough
CT: control target
= control target key end

     0   :  { %9 = vsyncpa [#allocation3], 0  ;;  %s290_s0 = inlined_call_operand.hbm [shape: f32[8,64], index: 0, kind: input, shape index: {}]   ;;  %s291_s1 = inlined_call_operand.hbm [shape: f32[4,64], index: 1, kind: input, shape index: {}]   ;;  %s292_s2 = inlined_call_operand.hbm [shape: f32[8,64], index: 2, kind: output, shape index: {0}]   ;;  %s293_s3 = inlined_call_operand.hbm [shape: f32[4,64], index: 3, kind: output, shape index: {1}]  }
   0x1   :  { %10 = vsyncpa [#allocation6], 0 }
   0x2   :  { %11 = vsyncpa [#allocation4], 0 }
   0x3   :  { %12 = vsyncpa [#allocation9], 0  ;;  %s218_s12 = smov [#allocation2]   ;;  %s219_s14 = smov [#allocation5]  }
   0x4   :  { %s19_s13 = sshll.u32 %s218_s12, 4  ;;  %s29_s15 = sshll.u32 %s219_s14, 4  ;;  %s20_s13 = int_to_ptr.vmem [resolvable:$true] %s19_s13  ;;  %s30_s15 = int_to_ptr.vmem [resolvable:$true] %s29_s15 }
   0x5   :  { %s122_s18 = scalar_lea.hbm %s290_s0, 128 }
   0x6   :  { %p123_p0 = scmp.ne.s32.totalorder %s290_s0, %s122_s18  ;;  %p126_p1 = scmp.lt.u32.totalorder %s122_s18, %s290_s0 }
   0x8   :  { %p128_p2 = pnand %p126_p1, %p123_p0 }
   0xa   :  { %131 = shalt.err (!%p128_p2)
}
   0xb   :  { %s132_s23 = scalar_lea.vmem %s20_s13, 128  ;;  %p137_p4 = scmp.lt.s32.totalorder %s20_s13, %s20_s13 }
   0xc   :  { %p133_p3 = scmp.ne.s32.totalorder %s20_s13, %s132_s23  ;;  %p138_p5 = scmp.lt.s32.totalorder %s132_s23, %s132_s23 }
   0xe   :  { %p139_p6 = por %p138_p5, %p137_p4 }
  0x10   :  { %p140_p7 = pnand %p139_p6, %p133_p3 }
  0x12   :  { %143 = shalt.err (!%p140_p7)
}
  0x13   :  { %22 = dma.hbm_to_vmem [thread:$0]  %s290_s0, 128, %s20_s13, [#allocation3]  }
  0x14   :  { %s144_s28 = scalar_lea.hbm %s291_s1, 64 }
  0x15   :  { %p145_p8 = scmp.ne.s32.totalorder %s291_s1, %s144_s28  ;;  %p148_p9 = scmp.lt.u32.totalorder %s144_s28, %s291_s1 }
  0x17   :  { %p150_p10 = pnand %p148_p9, %p145_p8 }
  0x19   :  { %153 = shalt.err (!%p150_p10)
}
  0x1a   :  { %s154_s6 = scalar_lea.vmem %s30_s15, 64  ;;  %p159_p12 = scmp.lt.s32.totalorder %s30_s15, %s30_s15 }
  0x1b   :  { %p155_p11 = scmp.ne.s32.totalorder %s30_s15, %s154_s6  ;;  %p160_p13 = scmp.lt.s32.totalorder %s154_s6, %s154_s6 }
  0x1d   :  { %p161_p0 = por %p160_p13, %p159_p12 }
  0x1f   :  { %p162_p1 = pnand %p161_p0, %p155_p11 }
  0x21   :  { %165 = shalt.err (!%p162_p1)
}
  0x22   :  { %32 = dma.hbm_to_vmem [thread:$0]  %s291_s1, 64, %s30_s15, [#allocation6]  }
  0x23   :  { %210 = dma.done.wait [#allocation3], 128  }
  0x24   :  { %211 = vsyncadd [#allocation3], 4294967168 }
  0x25   :  { %212 = dma.done.wait [#allocation6], 64  }
  0x26   :  { %213 = vsyncadd [#allocation6], 4294967232  ;;  %v39_v0 = vld [vmem:[#allocation2] sm:$0xff]  ;;  %v42_v6 = vld [vmem:[#allocation5 + $0x2] sm:$0x1]  ;;  %s220_s1 = smov [#allocation8]   ;;  %v65_v26 = vlaneseq }
  0x27   :  { %v44_v1 = vrot.slane %v39_v0, 4  ;;  %v78_v9 = vmul.f32 0.9, %v42_v6  ;;  %v43_v19 = vld [vmem:[#allocation5 + $0x3] sm:$0x1]  ;;  %s102_s8 = sshll.u32 %s220_s1, 4  ;;  %s103_s8 = int_to_ptr.vmem [resolvable:$true] %s102_s8 }
  0x28   :  { %v82_v22 = vmul.f32 0.9, %v43_v19  ;;  %s166_s9 = scalar_lea.vmem %s103_s8, 64  ;;  %p171_p3 = scmp.lt.s32.totalorder %s103_s8, %s103_s8 }
  0x29   :  { %v45_v2 = vadd.f32 %v44_v1, %v39_v0  ;;  %p167_p2 = scmp.ne.s32.totalorder %s103_s8, %s166_s9  ;;  %p172_p4 = scmp.lt.s32.totalorder %s166_s9, %s166_s9 }
  0x2b   :  { %v46_v3 = vrot.slane %v45_v2, 2  ;;  %p173_p5 = por %p172_p4, %p171_p3 }
  0x2d   :  { %v47_v4 = vadd.f32 %v46_v3, %v45_v2  ;;  %p174_p6 = pnand %p173_p5, %p167_p2 }
  0x2f   :  { %v48_v5 = vrot.slane %v47_v4, 1 }
  0x31   :  { %v49_v7 = vadd.f32 %v48_v5, %v47_v4 }
  0x33   :  { %v50_v8 = vmul.f32 0.125, %v49_v7 }
  0x35   :  { %v51_v10 = vsub.f32 %v39_v0, %v50_v8  ;;  %76 = vst [vmem:[#allocation8] sm:$0x1] %v50_v8  ;;  %v79_v11 = vmul.f32 0.1, %v50_v8 }
  0x37   :  { %v52_v12 = vmul.f32 %v51_v10, %v51_v10  ;;  %v80_v13 = vadd.f32 %v79_v11, %v78_v9 }
  0x39   :  { %v53_v14 = vrot.slane %v52_v12, 4  ;;  %81 = vst [vmem:[#allocation8 + $0x2] sm:$0x1] %v80_v13 }
  0x3b   :  { %v54_v15 = vadd.f32 %v53_v14, %v52_v12 }
  0x3d   :  { %v55_v16 = vrot.slane %v54_v15, 2 }
  0x3f   :  { %v56_v17 = vadd.f32 %v55_v16, %v54_v15 }
  0x41   :  { %v57_v18 = vrot.slane %v56_v17, 1 }
  0x43   :  { %v58_v20 = vadd.f32 %v57_v18, %v56_v17 }
  0x45   :  { %v59_v21 = vmul.f32 0.14285715, %v58_v20 }
  0x47   :  { %v60_v23 = vadd.f32 1e-05, %v59_v21  ;;  %77 = vst [vmem:[#allocation8 + $0x1] sm:$0x1] %v59_v21  ;;  %v83_v24 = vmul.f32 0.1, %v59_v21 }
  0x49   :  { %120 = vrsqrt.f32 %v60_v23  ;;  %v84_v25 = vadd.f32 %v83_v24, %v82_v22 }
  0x4b   :  { %85 = vst [vmem:[#allocation8 + $0x3] sm:$0x1] %v84_v25 }
  0x4c   :  { %177 = shalt.err (!%p174_p6)
}
  0x4d   :  { %s178_s12 = scalar_lea.hbm %s293_s3, 64 }
  0x4e   :  { %p179_p7 = scmp.ne.s32.totalorder %s293_s3, %s178_s12  ;;  %p182_p8 = scmp.lt.u32.totalorder %s178_s12, %s293_s3 }
  0x50   :  { %p184_p9 = pnand %p182_p8, %p179_p7 }
  0x52   :  { %187 = shalt.err (!%p184_p9)
}
  0x53   :  { %105 = dma.vmem_to_hbm [thread:$0]  %s103_s8, 64, %s293_s3, [#allocation9]   ;;  %v66_v27 = vshrl.u32 %v65_v26, 7  ;;  %v40_v28 = vld [vmem:[#allocation5] sm:$0x1]  ;;  %v121_v30 = vpop.eup %120 }
  0x54   :  { %v62_v31 = vmul.f32 %v121_v30, %v40_v28  ;;  %v41_v32 = vld [vmem:[#allocation5 + $0x1] sm:$0x1]  ;;  %s221_s19 = smov [#allocation7]  }
  0x55   :  { %v67_v29 = vsub.s32 0, %v66_v27  ;;  %s92_s20 = sshll.u32 %s221_s19, 4  ;;  %s93_s20 = int_to_ptr.vmem [resolvable:$true] %s92_s20 }
  0x56   :  { %v63_v33 = vmul.f32 %v62_v31, %v50_v8  ;;  %s188_s21 = scalar_lea.vmem %s93_s20, 128  ;;  %p193_p11 = scmp.lt.s32.totalorder %s93_s20, %s93_s20 }
  0x57   :  { %v68_v34 = vrot.slane %v62_v31, %v67_v29  ;;  %p189_p10 = scmp.ne.s32.totalorder %s93_s20, %s188_s21  ;;  %p194_p12 = scmp.lt.s32.totalorder %s188_s21, %s188_s21 }
  0x58   :  { %v64_v35 = vsub.f32 %v41_v32, %v63_v33 }
  0x59   :  { %v69_v36 = vmul.f32 %v68_v34, %v39_v0  ;;  %p195_p13 = por %p194_p12, %p193_p11 }
  0x5a   :  { %v73_v37 = vrot.slane %v64_v35, %v67_v29 }
  0x5b   :  { %p196_p0 = pnand %p195_p13, %p189_p10 }
  0x5c   :  { %v74_v38 = vadd.f32 %v73_v37, %v69_v36 }
  0x5e   :  { %75 = vst [vmem:[#allocation7] sm:$0xff] %v74_v38 }
  0x5f   :  { %199 = shalt.err (!%p196_p0)
}
  0x60   :  { %s200_s23 = scalar_lea.hbm %s292_s2, 128 }
  0x61   :  { %p201_p1 = scmp.ne.s32.totalorder %s292_s2, %s200_s23  ;;  %p204_p2 = scmp.lt.u32.totalorder %s200_s23, %s292_s2 }
  0x63   :  { %p206_p3 = pnand %p204_p2, %p201_p1 }
  0x65   :  { %209 = shalt.err (!%p206_p3)
}
  0x66   :  { %95 = dma.vmem_to_hbm [thread:$0]  %s93_s20, 128, %s292_s2, [#allocation4]  }
  0x67   :  { %214 = dma.done.wait [#allocation4], 128  }
  0x68   :  { %215 = vsyncadd [#allocation4], 4294967168 }
  0x69   :  { %216 = dma.done.wait [#allocation9], 64  }
  0x6a   :  { %217 = vsyncadd [#allocation9], 4294967232 }
  0x6b   :  { %112 = vsyncpa [#allocation3], 1 }
  0x6c   :  { %113 = vsyncpa [#allocation6], 1 }
  0x6d   :  { %114 = vsyncpa [#allocation4], 1 }
  0x6e   :  { %115 = vsyncpa [#allocation9], 1 }

</bundles_post_ra>
